<compile_context>
chip_gen: v5e
topology: v5e:2x2
jax: 0.10.0
libtpu: 0.0.40
codegen_flags: <defaults>
</compile_context>

<pallas_src>
from typing import NamedTuple, Optional

import jax
import jax.numpy as jnp
from jax.experimental import pallas as pl
from jax.experimental.pallas import tpu as pltpu


# --------------------------------------------------------------------------- #
# helpers
# --------------------------------------------------------------------------- #
def _round_up(n: int, m: int) -> int:
    return ((n + m - 1) // m) * m


def _cdiv(a: int, b: int) -> int:
    return -(-a // b)


def _balanced_tile(dim: int, cap: int, align: int):
    """Tile size that is a multiple of `align`, <= ~cap, and splits `dim` into
    near-equal chunks to minimize padding waste. Returns (tile, padded_dim)."""
    n_tiles = max(1, _cdiv(dim, cap))
    tile = _round_up(_cdiv(dim, n_tiles), align)
    return tile, n_tiles * tile


def _detect_num_cores() -> int:
    """Best-effort TensorCore count per chip (v7x has 2; v5e/v6e have 1)."""
    try:
        d = jax.devices()[0]
        if d.platform != "tpu":
            return 1
        return max(1, int(getattr(d, "num_cores", 1)))
    except Exception:
        return 1


class MultiNodePackedParams(NamedTuple):
    """Pre-packed parameter layout (compute once, reuse every forward call)."""
    w_packed: jax.Array   # (k_pad, n_pad) contraction-major, zero padded
    b_packed: jax.Array   # (1, n_pad) f32, biases summed over sequence, padded
    out_features: int     # O
    k: int                # S * L (unpadded contraction size)
    tn: int               # N tile
    tk: int               # K tile


# --------------------------------------------------------------------------- #
# kernel
# --------------------------------------------------------------------------- #
def _fused_matmul_bias_kernel(x_ref, w_ref, b_ref, o_ref):
    # grid = (split_core, m_tile, n_tile, k_tile); K is innermost / "arbitrary".
    c = pl.program_id(0)
    k = pl.program_id(3)

    partial = jnp.dot(x_ref[...], w_ref[...], preferred_element_type=jnp.float32)

    # First K step writes directly (no zero-init store), later steps accumulate
    # straight into the resident f32 output block (no scratch accumulator).
    @pl.when(k == 0)
    def _():
        o_ref[...] = partial

    @pl.when(k > 0)
    def _():
        o_ref[...] += partial

    # Summed bias added exactly once: last K step of split-slab 0 only.
    @pl.when(jnp.logical_and(k == pl.num_programs(3) - 1, c == 0))
    def _():
        o_ref[...] = o_ref[...] + b_ref[...]


# --------------------------------------------------------------------------- #
# parameter packing (hoisted out of the hot path)
# --------------------------------------------------------------------------- #
def pack_multi_node_params(weights, biases, *, compute_dtype=None,
                           num_cores: Optional[int] = None) -> MultiNodePackedParams:
    """weights: (S, O, L) PyTorch-Linear layout; biases: (S, O)."""
    S, O, L = weights.shape
    K = S * L
    dtype = weights.dtype if compute_dtype is None else compute_dtype
    n_cores = _detect_num_cores() if num_cores is None else int(num_cores)

    # N tiling: lane-dense, balanced padding, cap 512.
    tn, n_pad = _balanced_tile(O, 512, 128)

    # K tiling: cap 2048, balanced padding; keep the K-tile count a multiple of
    # n_cores so the apply step can optionally split K across TensorCores.
    k_tiles = max(1, _cdiv(K, 2048))
    if n_cores > 1:
        k_tiles = _round_up(k_tiles, n_cores)
    tk = _round_up(_cdiv(K, k_tiles), 128)
    k_pad = k_tiles * tk

    # Contraction-major weight matrix (no in-kernel transpose), zero padded.
    w2 = jnp.transpose(weights, (0, 2, 1)).reshape(K, O).astype(dtype)
    w_p = jnp.pad(w2, ((0, k_pad - K), (0, n_pad - O)))

    # Biases summed once over the sequence axis (added at finalize in-kernel).
    bsum = jnp.sum(biases.astype(jnp.float32), axis=0)
    b_p = jnp.pad(bsum, (0, n_pad - O)).reshape(1, n_pad)

    return MultiNodePackedParams(w_p, b_p, O, K, tn, tk)


# --------------------------------------------------------------------------- #
# forward call
# --------------------------------------------------------------------------- #
def multi_node_output_apply(x, packed: MultiNodePackedParams, *,
                            num_cores: Optional[int] = None):
    """x: (B, S, L) -> (B, O)."""
    B, S, L = x.shape
    K = S * L
    assert K == packed.k, "packed params were built for a different S*L"

    compute_dtype = packed.w_packed.dtype
    O = packed.out_features
    tn, tk = packed.tn, packed.tk
    k_pad, n_pad = packed.w_packed.shape

    # M tiling: balanced padding, cap 256, sublane-aligned.
    tm, m_pad = _balanced_tile(B, 256, 8)

    m_tiles = m_pad // tm
    n_tiles = n_pad // tn
    k_tiles = k_pad // tk

    # Split K across TensorCores only when there are fewer parallel output
    # tiles than cores (small B and O); otherwise M/N "parallel" axes already
    # give the megacore enough independent work.
    n_cores = _detect_num_cores() if num_cores is None else int(num_cores)
    if n_cores > 1 and (m_tiles * n_tiles) < n_cores and (k_tiles % n_cores) == 0:
        n_split = n_cores
    else:
        n_split = 1
    kpc = k_tiles // n_split   # K tiles handled per split slab

    x2 = x.reshape(B, K).astype(compute_dtype)
    x_p = jnp.pad(x2, ((0, m_pad - B), (0, k_pad - K)))   # zero-pad: no effect on sum

    # Explicit VMEM budget: double-buffered x/w tiles + resident f32 output + bias.
    itemsize = jnp.dtype(compute_dtype).itemsize
    tile_bytes = (2 * (tm * tk + tk * tn) * itemsize) + (2 * tm * tn * 4) + (2 * tn * 4)
    vmem_limit = int(min(max(2 * tile_bytes, 24 << 20), 48 << 20))

    cost = pl.CostEstimate(
        flops=2 * B * O * K,
        transcendentals=0,
        bytes_accessed=itemsize * (B * K + K * O) + 4 * B * O + 4 * O,
    )

    grid = (n_split, m_tiles, n_tiles, kpc)

    out_padded = pl.pallas_call(
        _fused_matmul_bias_kernel,
        out_shape=jax.ShapeDtypeStruct((n_split * m_pad, n_pad), jnp.float32),
        grid_spec=pltpu.PrefetchScalarGridSpec(
            num_scalar_prefetch=0,
            grid=grid,
            in_specs=[
                # x tile (tm, tk): block row i, K block offset by split slab c.
                pl.BlockSpec((tm, tk), lambda c, i, j, k: (i, c * kpc + k)),
                # weight tile (tk, tn): contraction-major, no in-kernel transpose.
                pl.BlockSpec((tk, tn), lambda c, i, j, k: (c * kpc + k, j)),
                # summed bias row (1, tn).
                pl.BlockSpec((1, tn), lambda c, i, j, k: (0, j)),
            ],
            # Each split slab writes its own (m_pad, n_pad) band of the output.
            out_specs=pl.BlockSpec((tm, tn), lambda c, i, j, k: (c * m_tiles + i, j)),
        ),
        compiler_params=pltpu.CompilerParams(
            dimension_semantics=("parallel", "parallel", "parallel", "arbitrary"),
            vmem_limit_bytes=vmem_limit,
        ),
        cost_estimate=cost,
    )(x_p, packed.w_packed, packed.b_packed)

    if n_split > 1:
        # Cheap XLA reduction over the per-core partial slabs (bias was added
        # only to slab 0, so it lands exactly once).
        out_padded = out_padded.reshape(n_split, m_pad, n_pad).sum(axis=0)

    return out_padded[:B, :O].astype(x.dtype)


def multi_node_output_layer(x, weights, biases, *, compute_dtype=None,
                            num_cores: Optional[int] = None):
    """One-shot convenience wrapper (packs params every call; prefer packing once)."""
    packed = pack_multi_node_params(weights, biases, compute_dtype=compute_dtype,
                                    num_cores=num_cores)
    return multi_node_output_apply(x, packed, num_cores=num_cores)


# --------------------------------------------------------------------------- #
# self-test
# --------------------------------------------------------------------------- #
if __name__ == "__main__":
    # Small shapes consistent with the module:
    #   batch=2, sequence_length=8, latent_space_size=32, output_size=16
    B, S, L, O = 2, 8, 32, 16

    key = jax.random.PRNGKey(0)
    kx, kw, kb = jax.random.split(key, 3)

    x = jax.random.normal(kx, (B, S, L), dtype=jnp.float32)
    # Per-position Linear params (PyTorch Linear: weight (O, L), bias (O,)).
    weights = jax.random.normal(kw, (S, O, L), dtype=jnp.float32) * 0.1
    biases = jax.random.normal(kb, (S, O), dtype=jnp.float32) * 0.1

    # Pure-JAX reference of the PyTorch forward.
    ref = jnp.einsum("bsl,sol->bo", x, weights) + biases.sum(axis=0)

    # Path 1: single-slab layout (K as one chunk), f32.
    packed1 = pack_multi_node_params(weights, biases, num_cores=1)
    out1 = jax.block_until_ready(multi_node_output_apply(x, packed1, num_cores=1))
    assert out1.shape == (B, O)
    assert jnp.allclose(out1, ref, atol=1e-4, rtol=1e-4)

    # Path 2: split-K layout (the 2-TensorCore v7x path; on 1-core chips the
    # extra grid axis just runs serially and stays correct).
    packed2 = pack_multi_node_params(weights, biases, num_cores=2)
    out2 = jax.block_until_ready(multi_node_output_apply(x, packed2, num_cores=2))
    assert jnp.allclose(out2, ref, atol=1e-4, rtol=1e-4)

    # Path 3: bf16 weights/activations with f32 accumulation (HBM-BW option).
    packed3 = pack_multi_node_params(weights, biases,
                                     compute_dtype=jnp.bfloat16, num_cores=1)
    out3 = jax.block_until_ready(multi_node_output_apply(x, packed3, num_cores=1))
    assert jnp.allclose(out3, ref, atol=5e-2, rtol=5e-2)

    print("KERNEL_OK")
</pallas_src>

<mosaic_0001>
module attributes {stable_mosaic.version = 11 : i64} {
  func.func @_fused_matmul_bias_kernel(%arg0: i32, %arg1: i32, %arg2: i32, %arg3: i32, %arg4: memref<8x256xf32, #tpu.memory_space<vmem>>, %arg5: memref<256x128xf32, #tpu.memory_space<vmem>>, %arg6: memref<1x128xf32, #tpu.memory_space<vmem>>, %arg7: memref<8x128xf32, #tpu.memory_space<vmem>>) attributes {dimension_semantics = [#tpu.dimension_semantics<parallel>, #tpu.dimension_semantics<parallel>, #tpu.dimension_semantics<parallel>, #tpu.dimension_semantics<arbitrary>], iteration_bounds = array<i64: 1, 1, 1, 1>, scalar_prefetch = 0 : i64, scratch_operands = 0 : i64, tpu.core_type = #tpu.core_type<tc>, window_params = [{transform_indices = @transform_0, window_bounds = array<i64: 8, 256>}, {transform_indices = @transform_1, window_bounds = array<i64: 256, 128>}, {transform_indices = @transform_2, window_bounds = array<i64: 1, 128>}, {transform_indices = @transform_3, window_bounds = array<i64: 8, 128>}]} {
    %c0 = arith.constant 0 : index
    %c0_0 = arith.constant 0 : index
    %0 = vector.load %arg4[%c0, %c0_0] : memref<8x256xf32, #tpu.memory_space<vmem>>, vector<8x256xf32>
    %c0_1 = arith.constant 0 : index
    %c0_2 = arith.constant 0 : index
    %1 = vector.load %arg5[%c0_1, %c0_2] : memref<256x128xf32, #tpu.memory_space<vmem>>, vector<256x128xf32>
    %cst = arith.constant dense<0.000000e+00> : vector<8x128xf32>
    %2 = tpu.matmul %0, %1, %cst {dimension_numbers = #tpu.dot_dimension_numbers<[1], [0], [0], [1], [0, 0, 1, 1], [], []>} : vector<8x256xf32>, vector<256x128xf32>, vector<8x128xf32> -> vector<8x128xf32>
    %c0_i32 = arith.constant 0 : i32
    %3 = arith.cmpi eq, %arg3, %c0_i32 : i32
    %4 = arith.extui %3 : i1 to i32
    %c0_i32_3 = arith.constant 0 : i32
    %5 = arith.cmpi ne, %4, %c0_i32_3 : i32
    scf.if %5 {
      %c0_9 = arith.constant 0 : index
      %c0_10 = arith.constant 0 : index
      %14 = vector.load %arg7[%c0_9, %c0_10] : memref<8x128xf32, #tpu.memory_space<vmem>>, vector<8x128xf32>
      tpu.vector_store %arg7[%c0_9, %c0_10], %2 {strides = array<i32>} : memref<8x128xf32, #tpu.memory_space<vmem>>, vector<8x128xf32>,
    } else {
    }
    %c0_i32_4 = arith.constant 0 : i32
    %6 = arith.cmpi sgt, %arg3, %c0_i32_4 : i32
    %7 = arith.extui %6 : i1 to i32
    %c0_i32_5 = arith.constant 0 : i32
    %8 = arith.cmpi ne, %7, %c0_i32_5 : i32
    scf.if %8 {
      %c0_9 = arith.constant 0 : index
      %c0_10 = arith.constant 0 : index
      %14 = vector.load %arg7[%c0_9, %c0_10] : memref<8x128xf32, #tpu.memory_space<vmem>>, vector<8x128xf32>
      %15 = arith.addf %14, %2 : vector<8x128xf32>
      %c0_11 = arith.constant 0 : index
      %c0_12 = arith.constant 0 : index
      %16 = vector.load %arg7[%c0_11, %c0_12] : memref<8x128xf32, #tpu.memory_space<vmem>>, vector<8x128xf32>
      tpu.vector_store %arg7[%c0_11, %c0_12], %15 {strides = array<i32>} : memref<8x128xf32, #tpu.memory_space<vmem>>, vector<8x128xf32>,
    } else {
    }
    %c0_i32_6 = arith.constant 0 : i32
    %9 = arith.cmpi eq, %arg3, %c0_i32_6 : i32
    %c0_i32_7 = arith.constant 0 : i32
    %10 = arith.cmpi eq, %arg0, %c0_i32_7 : i32
    %11 = arith.andi %9, %10 : i1
    %12 = arith.extui %11 : i1 to i32
    %c0_i32_8 = arith.constant 0 : i32
    %13 = arith.cmpi ne, %12, %c0_i32_8 : i32
    scf.if %13 {
      %c0_9 = arith.constant 0 : index
      %c0_10 = arith.constant 0 : index
      %14 = vector.load %arg7[%c0_9, %c0_10] : memref<8x128xf32, #tpu.memory_space<vmem>>, vector<8x128xf32>
      %c0_11 = arith.constant 0 : index
      %c0_12 = arith.constant 0 : index
      %15 = vector.load %arg6[%c0_11, %c0_12] : memref<1x128xf32, #tpu.memory_space<vmem>>, vector<1x128xf32>
      %16 = vector.broadcast %15 : vector<1x128xf32> to vector<8x128xf32>
      %17 = arith.addf %14, %16 : vector<8x128xf32>
      %c0_13 = arith.constant 0 : index
      %c0_14 = arith.constant 0 : index
      %18 = vector.load %arg7[%c0_13, %c0_14] : memref<8x128xf32, #tpu.memory_space<vmem>>, vector<8x128xf32>
      tpu.vector_store %arg7[%c0_13, %c0_14], %17 {strides = array<i32>} : memref<8x128xf32, #tpu.memory_space<vmem>>, vector<8x128xf32>,
    } else {
    }
    return
  }
  func.func @transform_0(%arg0: i32, %arg1: i32, %arg2: i32, %arg3: i32) -> (i32, i32) {
    %c1_i32 = arith.constant 1 : i32
    %0 = arith.muli %arg0, %c1_i32 : i32
    %1 = arith.addi %0, %arg3 : i32
    %c0_i32 = arith.constant 0 : i32
    return %arg1, %1 : i32, i32
  }
  func.func @transform_1(%arg0: i32, %arg1: i32, %arg2: i32, %arg3: i32) -> (i32, i32) {
    %c1_i32 = arith.constant 1 : i32
    %0 = arith.muli %arg0, %c1_i32 : i32
    %1 = arith.addi %0, %arg3 : i32
    %c0_i32 = arith.constant 0 : i32
    return %1, %arg2 : i32, i32
  }
  func.func @transform_2(%arg0: i32, %arg1: i32, %arg2: i32, %arg3: i32) -> (i32, i32) {
    %c0_i32 = arith.constant 0 : i32
    %c0_i32_0 = arith.constant 0 : i32
    return %c0_i32, %arg2 : i32, i32
  }
  func.func @transform_3(%arg0: i32, %arg1: i32, %arg2: i32, %arg3: i32) -> (i32, i32) {
    %c1_i32 = arith.constant 1 : i32
    %0 = arith.muli %arg0, %c1_i32 : i32
    %1 = arith.addi %0, %arg1 : i32
    %c0_i32 = arith.constant 0 : i32
    return %1, %arg2 : i32, i32
  }
}

</mosaic_0001>

<bundles_post_ra>
// kernel: tpu_custom_call.1
= control target key start
LH: loop header
LB: loop body
LE: loop exit
PB: predicated region body
PF: predicated region fallthrough
CT: control target
= control target key end

     0   :  { %8 = vsyncpa [#allocation3], 0  ;;  %s298_s0 = inlined_call_operand.hbm [shape: f32[8,256], index: 0, kind: input, shape index: {}]   ;;  %s299_s1 = inlined_call_operand.hbm [shape: f32[256,128], index: 1, kind: input, shape index: {}]   ;;  %s300_s2 = inlined_call_operand.vmem [shape: f32[1,128], index: 2, kind: input, shape index: {}]   ;;  %s301_s3 = inlined_call_operand.hbm [shape: f32[8,128], index: 3, kind: output, shape index: {}]  }
   0x1   :  { %9 = vsyncpa [#allocation6], 0 }
   0x2   :  { %10 = vsyncpa [#allocation4], 0  ;;  %s20_s14 = sshll.u32 %s298_s0, 4  ;;  %s261_s15 = smov [#allocation2]   ;;  %s21_s14 = int_to_ptr.hbm [resolvable:$true] %s20_s14 }
   0x3   :  { %s22_s16 = sshll.u32 %s261_s15, 4  ;;  %s34_s19 = sshll.u32 %s299_s1, 4  ;;  %s23_s16 = int_to_ptr.vmem [resolvable:$true] %s22_s16  ;;  %s35_s19 = int_to_ptr.hbm [resolvable:$true] %s34_s19 }
   0x4   :  { %25 = dma.hbm_to_vmem [thread:$0]  %s21_s14, 256, %s23_s16, [#allocation3]  }
   0x5   :  { %s262_s20 = smov [#allocation5]   ;;  %s263_s22 = smov 128  }
   0x6   :  { %s36_s21 = sshll.u32 %s262_s20, 4  ;;  %s264_s23 = smov 8   ;;  %s37_s21 = int_to_ptr.vmem [resolvable:$true] %s36_s21 }
   0x7   :  { %42 = dma.hbm_to_vmem [thread:$0]  %s35_s19, 4096, %s37_s21, [#allocation6], %s263_s22, %s263_s22, %s264_s23  }
   0x8   :  { %255 = dma.done.wait [#allocation3], 256  }
   0x9   :  { %256 = vsyncadd [#allocation3], 4294967040 }
   0xa   :  { %257 = dma.done.wait [#allocation6], 4096  }
   0xb   :  { %258 = vsyncadd [#allocation6], 4294963200  ;;  %v75_v0 = vld [vmem:[#allocation5 + $0x78] sm:$0xff]  ;;  %v74_v2 = vld [vmem:[#allocation5 + $0x70] sm:$0xff]  ;;  %s265_s24 = smov [#allocation7]   ;;  %s166_s28 = sshll.u32 %s301_s3, 4  ;;  %s167_s28 = int_to_ptr.hbm [resolvable:$true] %s166_s28 }
   0xc   :  { %v91_v1 = vld [vmem:[#allocation5 + $0xf8] sm:$0xff]  ;;  %92 = vmatpush.msra.mxu0 %v75_v0  ;;  %v90_v3 = vld [vmem:[#allocation5 + $0xf0] sm:$0xff]  ;;  %v73_v4 = vld [vmem:[#allocation5 + $0x68] sm:$0xff]  ;;  %s164_s25 = sshll.u32 %s265_s24, 4  ;;  %s165_s25 = int_to_ptr.vmem [resolvable:$true] %s164_s25 }
   0xd   :  { %112 = vmatpush.msra.mxu1 %v91_v1  ;;  %v89_v5 = vld [vmem:[#allocation5 + $0xe8] sm:$0xff]  ;;  %v72_v6 = vld [vmem:[#allocation5 + $0x60] sm:$0xff]  ;;  %v71_v8 = vld [vmem:[#allocation5 + $0x58] sm:$0xff] }
   0xe   :  { %93 = vmatpush.msra.mxu0 %v74_v2  ;;  %v88_v7 = vld [vmem:[#allocation5 + $0xe0] sm:$0xff]  ;;  %v87_v9 = vld [vmem:[#allocation5 + $0xd8] sm:$0xff]  ;;  %v70_v10 = vld [vmem:[#allocation5 + $0x50] sm:$0xff] }
   0xf   :  { %113 = vmatpush.msra.mxu1 %v90_v3  ;;  %v86_v11 = vld [vmem:[#allocation5 + $0xd0] sm:$0xff]  ;;  %v69_v12 = vld [vmem:[#allocation5 + $0x48] sm:$0xff]  ;;  %v68_v14 = vld [vmem:[#allocation5 + $0x40] sm:$0xff] }
  0x10   :  { %94 = vmatpush.msra.mxu0 %v73_v4  ;;  %v85_v13 = vld [vmem:[#allocation5 + $0xc8] sm:$0xff]  ;;  %v84_v15 = vld [vmem:[#allocation5 + $0xc0] sm:$0xff]  ;;  %v67_v16 = vld [vmem:[#allocation5 + $0x38] sm:$0xff] }
  0x11   :  { %114 = vmatpush.msra.mxu1 %v89_v5  ;;  %v83_v17 = vld [vmem:[#allocation5 + $0xb8] sm:$0xff]  ;;  %v66_v18 = vld [vmem:[#allocation5 + $0x30] sm:$0xff]  ;;  %v65_v20 = vld [vmem:[#allocation5 + $0x28] sm:$0xff] }
  0x12   :  { %95 = vmatpush.msra.mxu0 %v72_v6  ;;  %v82_v19 = vld [vmem:[#allocation5 + $0xb0] sm:$0xff]  ;;  %v81_v21 = vld [vmem:[#allocation5 + $0xa8] sm:$0xff]  ;;  %v64_v22 = vld [vmem:[#allocation5 + $0x20] sm:$0xff] }
  0x13   :  { %115 = vmatpush.msra.mxu1 %v88_v7  ;;  %v80_v23 = vld [vmem:[#allocation5 + $0xa0] sm:$0xff]  ;;  %v63_v24 = vld [vmem:[#allocation5 + $0x18] sm:$0xff]  ;;  %v62_v26 = vld [vmem:[#allocation5 + $0x10] sm:$0xff] }
  0x14   :  { %96 = vmatpush.msra.mxu0 %v71_v8  ;;  %v79_v25 = vld [vmem:[#allocation5 + $0x98] sm:$0xff]  ;;  %v78_v27 = vld [vmem:[#allocation5 + $0x90] sm:$0xff]  ;;  %v61_v28 = vld [vmem:[#allocation5 + $0x8] sm:$0xff] }
  0x15   :  { %116 = vmatpush.msra.mxu1 %v87_v9  ;;  %v77_v29 = vld [vmem:[#allocation5 + $0x88] sm:$0xff]  ;;  %v60_v30 = vld [vmem:[#allocation5] sm:$0xff]  ;;  %v58_v32 = vld [vmem:[#allocation2] sm:$0xff] }
  0x16   :  { %97 = vmatpush.msra.mxu0 %v70_v10  ;;  %v76_v31 = vld [vmem:[#allocation5 + $0x80] sm:$0xff]  ;;  %v59_v33 = vld [vmem:[#allocation2 + $0x8] sm:$0xff]  ;;  %v182_v34 = vld [vmem:[%s300_s2] ss:$0 sm:$0xff] }
  0x17   :  { %117 = vmatpush.msra.mxu1 %v86_v11 }
  0x18   :  { %98 = vmatpush.msra.mxu0 %v69_v12 }
  0x19   :  { %118 = vmatpush.msra.mxu1 %v85_v13 }
  0x1a   :  { %99 = vmatpush.msra.mxu0 %v68_v14 }
  0x1b   :  { %119 = vmatpush.msra.mxu1 %v84_v15 }
  0x1c   :  { %100 = vmatpush.msra.mxu0 %v67_v16 }
  0x1d   :  { %120 = vmatpush.msra.mxu1 %v83_v17 }
  0x1e   :  { %101 = vmatpush.msra.mxu0 %v66_v18 }
  0x1f   :  { %121 = vmatpush.msra.mxu1 %v82_v19 }
  0x20   :  { %102 = vmatpush.msra.mxu0 %v65_v20 }
  0x21   :  { %122 = vmatpush.msra.mxu1 %v81_v21 }
  0x22   :  { %103 = vmatpush.msra.mxu0 %v64_v22 }
  0x23   :  { %123 = vmatpush.msra.mxu1 %v80_v23 }
  0x24   :  { %104 = vmatpush.msra.mxu0 %v63_v24 }
  0x25   :  { %124 = vmatpush.msra.mxu1 %v79_v25 }
  0x26   :  { %105 = vmatpush.msra.mxu0 %v62_v26 }
  0x27   :  { %125 = vmatpush.msra.mxu1 %v78_v27 }
  0x28   :  { %106 = vmatpush.msra.mxu0 %v61_v28 }
  0x29   :  { %126 = vmatpush.msra.mxu1 %v77_v29 }
  0x2a   :  { %107 = vmatpush.msra.mxu0 %v60_v30 }
  0x2b   :  { %127 = vmatpush.msra.mxu1 %v76_v31  ;;  %108 = vmatmul.f32.vlgmr.msra.gmra.mxu0 %v58_v32 }
  0x2c   :  { %128 = vmatmul.f32.vlgmr.msra.gmra.mxu1 %v59_v33 }
  0xa8   :  { %v109_v35 = vpop.f32.mrf.mxu0 }
  0xa9   :  { %v129_v36 = vpop.f32.mrf.mxu1 }
  0xaa   :  { %v130_v37 = vadd.f32 %v129_v36, %v109_v35 }
  0xac   :  { %v154_v38 = vadd.f32 %v182_v34, %v130_v37 }
  0xae   :  { %155 = vst [vmem:[#allocation7] sm:$0xff] %v154_v38 }
  0xaf   :  { %169 = dma.vmem_to_hbm [thread:$0]  %s165_s25, 128, %s167_s28, [#allocation4]  }
  0xb0   :  { %259 = dma.done.wait [#allocation4], 128  }
  0xb1   :  { %260 = vsyncadd [#allocation4], 4294967168 }
  0xb2   :  { %174 = vsyncpa [#allocation3], 1 }
  0xb3   :  { %175 = vsyncpa [#allocation6], 1 }
  0xb4   :  { %176 = vsyncpa [#allocation4], 1 }

</bundles_post_ra>
